<compile_context>
chip_gen: v7x
topology: tpu7x:2x2x1
jax: 0.10.0
libtpu: 0.0.40
codegen_flags: <defaults>
</compile_context>

<pallas_src>
import functools

import jax
import jax.numpy as jnp
from jax.experimental import pallas as pl
from jax.experimental.pallas import tpu as pltpu


def _round_up(x, m):
    return ((x + m - 1) // m) * m


def _make_odenet_kernel(num_layers):
    """Build a kernel for a fixed (static) number of ConcatSquashLinear layers."""

    def kernel(*refs):
        # refs = (t_ref, x_ref, [w_l, small_l] * num_layers, o_ref)
        t_ref, x_ref = refs[0], refs[1]
        o_ref = refs[-1]
        params = refs[2:-1]

        t = t_ref[0, 0]                        # scalar time, read from SMEM
        h = x_ref[...].astype(jnp.float32)     # (TB, D0p) activations, f32

        for l in range(num_layers):
            w_ref = params[2 * l]              # (Dinp, Doutp), VMEM-resident
            s_ref = params[2 * l + 1]          # (4, Doutp) f32: rows [b, gw, gb, hb]
            s = s_ref[...]

            # MXU matmul: operand dtype = stored weight dtype (f32 or bf16),
            # f32 accumulation.
            z = jnp.dot(h.astype(w_ref.dtype), w_ref[...],
                        preferred_element_type=jnp.float32)

            # Tiny (1, Doutp) hyper-net math, recomputed per batch tile (cheap;
            # cannot be hoisted into pl.when(pid==0)-guarded scratch because
            # only one core sees pid==0 under megacore sharding).
            gate = jax.nn.sigmoid(s[1:2, :] * t + s[2:3, :])   # sigmoid(gw*t+gb)
            c = s[0:1, :] * gate + s[3:4, :] * t               # b*gate + hb*t

            # (x@W + b)*gate + hb*t  ==  (x@W)*gate + (b*gate + hb*t)
            h = z * gate + c                                   # (TB, Doutp)
            if l < num_layers - 1:
                h = jnp.tanh(h)

        o_ref[...] = h.astype(o_ref.dtype)

    return kernel


def init_odenet_params(key, input_dim, hidden_dims):
    """Deterministic parameter init matching the PyTorch module's shapes.

    Per-layer dict:
      w  : (dim_in, dim_out)   -- nn.Linear(dim_in, dim_out).weight, transposed
      b  : (1, dim_out)        -- nn.Linear bias
      gw : (1, dim_out)        -- hyper_gate weight (Linear(1, dim_out).weight.T)
      gb : (1, dim_out)        -- hyper_gate bias
      hb : (1, dim_out)        -- hyper_bias weight (no bias)
    """
    dims = [input_dim] + list(hidden_dims) + [input_dim]
    params = []
    for i in range(len(dims) - 1):
        din, dout = dims[i], dims[i + 1]
        key, k1, k2, k3, k4, k5 = jax.random.split(key, 6)
        bound = 1.0 / jnp.sqrt(jnp.float32(din))
        params.append(dict(
            w=jax.random.uniform(k1, (din, dout), jnp.float32, -bound, bound),
            b=jax.random.uniform(k2, (1, dout), jnp.float32, -bound, bound),
            gw=jax.random.uniform(k3, (1, dout), jnp.float32, -1.0, 1.0),
            gb=jax.random.uniform(k4, (1, dout), jnp.float32, -1.0, 1.0),
            hb=jax.random.uniform(k5, (1, dout), jnp.float32, -1.0, 1.0),
        ))
    return params


@functools.partial(jax.jit, static_argnames=("block_batch", "matmul_dtype"))
def odenet_forward(t, dx, params, *, block_batch=256, matmul_dtype=jnp.float32):
    """t: (1,1) float32 scalar time; dx: (B, input_dim) float32."""
    num_layers = len(params)
    batch, input_dim = dx.shape

    dims = [params[0]["w"].shape[0]] + [p["w"].shape[1] for p in params]
    assert dims[0] == input_dim and dims[-1] == input_dim
    # Lane-dense feature dims: pad every layer width to a multiple of 128.
    pdims = [_round_up(d, 128) for d in dims]

    # Batch tile: multiple of 8 sublanes, up to block_batch rows.
    tb = _round_up(min(block_batch, _round_up(batch, 8)), 8)
    b_pad = _round_up(batch, tb)
    grid = (b_pad // tb,)

    # Zero-pad activations; padded lanes/rows stay zero through the net.
    x = jnp.zeros((b_pad, pdims[0]), jnp.float32)
    x = x.at[:batch, :input_dim].set(dx.astype(jnp.float32))

    flat_params = []
    in_specs = [
        pl.BlockSpec(memory_space=pltpu.MemorySpace.SMEM),        # t (1,1) in SMEM
        pl.BlockSpec((tb, pdims[0]), lambda i: (i, 0)),           # x batch tile
    ]
    for l, p in enumerate(params):
        din, dout = p["w"].shape
        dinp, doutp = pdims[l], pdims[l + 1]
        w = jnp.zeros((dinp, doutp), jnp.float32).at[:din, :dout].set(p["w"])
        w = w.astype(matmul_dtype)
        small = jnp.zeros((4, doutp), jnp.float32)
        small = small.at[0, :dout].set(p["b"].reshape(-1))
        small = small.at[1, :dout].set(p["gw"].reshape(-1))
        small = small.at[2, :dout].set(p["gb"].reshape(-1))
        small = small.at[3, :dout].set(p["hb"].reshape(-1))
        flat_params += [w, small]
        # Constant index_map over the full array => loaded once, VMEM-resident.
        in_specs += [
            pl.BlockSpec((dinp, doutp), lambda i: (0, 0)),
            pl.BlockSpec((4, doutp), lambda i: (0, 0)),
        ]

    out_spec = pl.BlockSpec((tb, pdims[-1]), lambda i: (i, 0))

    # Cost estimate (matmuls dominate; tanh + sigmoid on hidden activations).
    w_elems = sum(pdims[l] * pdims[l + 1] for l in range(num_layers))
    w_bytes = w_elems * jnp.dtype(matmul_dtype).itemsize
    small_bytes = sum(4 * pdims[l + 1] * 4 for l in range(num_layers))
    flops = 2 * b_pad * w_elems
    transcendentals = b_pad * sum(pdims[l + 1] for l in range(num_layers - 1))
    bytes_accessed = (b_pad * pdims[0] * 4 + b_pad * pdims[-1] * 4
                      + w_bytes + small_bytes)

    # VMEM budget: resident weights + packed params (with (8,128) sublane
    # padding on the (4,D) refs) + double-buffered in/out tiles + headroom for
    # f32 intermediates.  Capped well below v7x's 64 MiB physical VMEM.
    resident = w_bytes + sum(8 * pdims[l + 1] * 4 for l in range(num_layers))
    tiles = 2 * tb * pdims[0] * 4 + 2 * tb * pdims[-1] * 4
    interm = 4 * tb * max(pdims) * 4
    vmem_limit = int(min(max(2 * (resident + tiles + interm), 16 * 1024 * 1024),
                         48 * 1024 * 1024))

    kernel = _make_odenet_kernel(num_layers)

    out = pl.pallas_call(
        kernel,
        out_shape=jax.ShapeDtypeStruct((b_pad, pdims[-1]), jnp.float32),
        grid_spec=pltpu.PrefetchScalarGridSpec(
            num_scalar_prefetch=0,
            grid=grid,
            in_specs=in_specs,
            out_specs=out_spec,
        ),
        compiler_params=pltpu.CompilerParams(
            dimension_semantics=("parallel",),     # megacore sharding on v7x
            vmem_limit_bytes=vmem_limit,
        ),
        cost_estimate=pl.CostEstimate(
            flops=flops,
            transcendentals=transcendentals,
            bytes_accessed=bytes_accessed,
        ),
    )(t, x, *flat_params)

    return out[:batch, :input_dim]


def odenet_reference(t, dx, params):
    """Pure-JAX reference for sanity checking (same op order as PyTorch)."""
    ts = t[0, 0]
    h = dx
    n = len(params)
    for l, p in enumerate(params):
        z = h @ p["w"] + p["b"]
        gate = jax.nn.sigmoid(p["gw"] * ts + p["gb"])
        z = z * gate + p["hb"] * ts
        if l < n - 1:
            z = jnp.tanh(z)
        h = z
    return h


if __name__ == "__main__":
    key = jax.random.PRNGKey(0)
    k_params, k_x, k_t = jax.random.split(key, 3)

    input_dim = 4
    hidden_dims = (32, 32)
    # Small demo, but enough rows to exercise the batch grid (2 tiles of 256
    # rows).  In a CNF solver, stack all RK-stage / trajectory evaluations into
    # this batch dimension rather than calling per-evaluation.
    batch = 512

    params = init_odenet_params(k_params, input_dim, hidden_dims)
    dx = jax.random.normal(k_x, (batch, input_dim), jnp.float32)
    t = jax.random.uniform(k_t, (1, 1), jnp.float32)  # scalar time as (1,1)

    ref = odenet_reference(t, dx, params)

    # f32 matmul path.
    out_f32 = jax.block_until_ready(odenet_forward(t, dx, params))
    assert out_f32.shape == (batch, input_dim)
    assert jnp.allclose(out_f32, ref, atol=1e-4, rtol=1e-4)

    # bf16-operand / f32-accumulate matmul path (MXU-native on v6e/v7x).
    out_bf16 = jax.block_until_ready(
        odenet_forward(t, dx, params, matmul_dtype=jnp.bfloat16))
    assert out_bf16.shape == (batch, input_dim)
    assert jnp.allclose(out_bf16, ref, atol=3e-2, rtol=3e-2)

    print("KERNEL_OK")
</pallas_src>

<mosaic_0001>
module attributes {stable_mosaic.version = 11 : i64} {
  func.func @kernel(%arg0: i32, %arg1: memref<1x1xf32, #tpu.memory_space<smem>>, %arg2: memref<256x128xf32, #tpu.memory_space<vmem>>, %arg3: memref<128x128xf32, #tpu.memory_space<vmem>>, %arg4: memref<4x128xf32, #tpu.memory_space<vmem>>, %arg5: memref<128x128xf32, #tpu.memory_space<vmem>>, %arg6: memref<4x128xf32, #tpu.memory_space<vmem>>, %arg7: memref<128x128xf32, #tpu.memory_space<vmem>>, %arg8: memref<4x128xf32, #tpu.memory_space<vmem>>, %arg9: memref<256x128xf32, #tpu.memory_space<vmem>>) attributes {dimension_semantics = [#tpu.dimension_semantics<parallel>], iteration_bounds = array<i64: 2>, scalar_prefetch = 0 : i64, scratch_operands = 0 : i64, tpu.core_type = #tpu.core_type<tc>, window_params = [{transform_indices = @transform_0, window_bounds = array<i64: 1, 1>}, {transform_indices = @transform_1, window_bounds = array<i64: 256, 128>}, {pipeline_mode = #tpu.pipeline_mode<synchronous>, transform_indices = @transform_2, window_bounds = array<i64: 128, 128>}, {pipeline_mode = #tpu.pipeline_mode<synchronous>, transform_indices = @transform_3, window_bounds = array<i64: 4, 128>}, {pipeline_mode = #tpu.pipeline_mode<synchronous>, transform_indices = @transform_4, window_bounds = array<i64: 128, 128>}, {pipeline_mode = #tpu.pipeline_mode<synchronous>, transform_indices = @transform_5, window_bounds = array<i64: 4, 128>}, {pipeline_mode = #tpu.pipeline_mode<synchronous>, transform_indices = @transform_6, window_bounds = array<i64: 128, 128>}, {pipeline_mode = #tpu.pipeline_mode<synchronous>, transform_indices = @transform_7, window_bounds = array<i64: 4, 128>}, {transform_indices = @transform_8, window_bounds = array<i64: 256, 128>}]} {
    %c0 = arith.constant 0 : index
    %c0_0 = arith.constant 0 : index
    %0 = memref.load %arg1[%c0, %c0_0] : memref<1x1xf32, #tpu.memory_space<smem>>
    %c0_1 = arith.constant 0 : index
    %c0_2 = arith.constant 0 : index
    %1 = vector.load %arg2[%c0_1, %c0_2] : memref<256x128xf32, #tpu.memory_space<vmem>>, vector<256x128xf32>
    %c0_3 = arith.constant 0 : index
    %c0_4 = arith.constant 0 : index
    %2 = vector.load %arg4[%c0_3, %c0_4] : memref<4x128xf32, #tpu.memory_space<vmem>>, vector<4x128xf32>
    %c0_5 = arith.constant 0 : index
    %c0_6 = arith.constant 0 : index
    %3 = vector.load %arg3[%c0_5, %c0_6] : memref<128x128xf32, #tpu.memory_space<vmem>>, vector<128x128xf32>
    %cst = arith.constant dense<0.000000e+00> : vector<256x128xf32>
    %4 = tpu.matmul %1, %3, %cst {dimension_numbers = #tpu.dot_dimension_numbers<[1], [0], [0], [1], [0, 0, 1, 1], [], []>} : vector<256x128xf32>, vector<128x128xf32>, vector<256x128xf32> -> vector<256x128xf32>
    %5 = vector.extract_strided_slice %2 {offsets = [1, 0], sizes = [1, 128], strides = [1, 1]} : vector<4x128xf32> to vector<1x128xf32>
    %6 = vector.broadcast %0 : f32 to vector<1x128xf32>
    %7 = arith.mulf %5, %6 : vector<1x128xf32>
    %8 = vector.extract_strided_slice %2 {offsets = [2, 0], sizes = [1, 128], strides = [1, 1]} : vector<4x128xf32> to vector<1x128xf32>
    %9 = arith.addf %7, %8 : vector<1x128xf32>
    %10 = arith.negf %9 : vector<1x128xf32>
    %11 = math.exp %10 : vector<1x128xf32>
    %cst_7 = arith.constant 1.000000e+00 : f32
    %12 = vector.broadcast %cst_7 : f32 to vector<1x128xf32>
    %13 = arith.addf %12, %11 : vector<1x128xf32>
    %14 = arith.divf %12, %13 : vector<1x128xf32>
    %15 = vector.extract_strided_slice %2 {offsets = [0, 0], sizes = [1, 128], strides = [1, 1]} : vector<4x128xf32> to vector<1x128xf32>
    %16 = arith.mulf %15, %14 : vector<1x128xf32>
    %17 = vector.extract_strided_slice %2 {offsets = [3, 0], sizes = [1, 128], strides = [1, 1]} : vector<4x128xf32> to vector<1x128xf32>
    %18 = vector.broadcast %0 : f32 to vector<1x128xf32>
    %19 = arith.mulf %17, %18 : vector<1x128xf32>
    %20 = arith.addf %16, %19 : vector<1x128xf32>
    %21 = vector.broadcast %14 : vector<1x128xf32> to vector<256x128xf32>
    %22 = arith.mulf %4, %21 : vector<256x128xf32>
    %23 = vector.broadcast %20 : vector<1x128xf32> to vector<256x128xf32>
    %24 = arith.addf %22, %23 : vector<256x128xf32>
    %25 = math.tanh %24 : vector<256x128xf32>
    %c0_8 = arith.constant 0 : index
    %c0_9 = arith.constant 0 : index
    %26 = vector.load %arg6[%c0_8, %c0_9] : memref<4x128xf32, #tpu.memory_space<vmem>>, vector<4x128xf32>
    %c0_10 = arith.constant 0 : index
    %c0_11 = arith.constant 0 : index
    %27 = vector.load %arg5[%c0_10, %c0_11] : memref<128x128xf32, #tpu.memory_space<vmem>>, vector<128x128xf32>
    %cst_12 = arith.constant dense<0.000000e+00> : vector<256x128xf32>
    %28 = tpu.matmul %25, %27, %cst_12 {dimension_numbers = #tpu.dot_dimension_numbers<[1], [0], [0], [1], [0, 0, 1, 1], [], []>} : vector<256x128xf32>, vector<128x128xf32>, vector<256x128xf32> -> vector<256x128xf32>
    %29 = vector.extract_strided_slice %26 {offsets = [1, 0], sizes = [1, 128], strides = [1, 1]} : vector<4x128xf32> to vector<1x128xf32>
    %30 = vector.broadcast %0 : f32 to vector<1x128xf32>
    %31 = arith.mulf %29, %30 : vector<1x128xf32>
    %32 = vector.extract_strided_slice %26 {offsets = [2, 0], sizes = [1, 128], strides = [1, 1]} : vector<4x128xf32> to vector<1x128xf32>
    %33 = arith.addf %31, %32 : vector<1x128xf32>
    %34 = arith.negf %33 : vector<1x128xf32>
    %35 = math.exp %34 : vector<1x128xf32>
    %cst_13 = arith.constant 1.000000e+00 : f32
    %36 = vector.broadcast %cst_13 : f32 to vector<1x128xf32>
    %37 = arith.addf %36, %35 : vector<1x128xf32>
    %38 = arith.divf %36, %37 : vector<1x128xf32>
    %39 = vector.extract_strided_slice %26 {offsets = [0, 0], sizes = [1, 128], strides = [1, 1]} : vector<4x128xf32> to vector<1x128xf32>
    %40 = arith.mulf %39, %38 : vector<1x128xf32>
    %41 = vector.extract_strided_slice %26 {offsets = [3, 0], sizes = [1, 128], strides = [1, 1]} : vector<4x128xf32> to vector<1x128xf32>
    %42 = vector.broadcast %0 : f32 to vector<1x128xf32>
    %43 = arith.mulf %41, %42 : vector<1x128xf32>
    %44 = arith.addf %40, %43 : vector<1x128xf32>
    %45 = vector.broadcast %38 : vector<1x128xf32> to vector<256x128xf32>
    %46 = arith.mulf %28, %45 : vector<256x128xf32>
    %47 = vector.broadcast %44 : vector<1x128xf32> to vector<256x128xf32>
    %48 = arith.addf %46, %47 : vector<256x128xf32>
    %49 = math.tanh %48 : vector<256x128xf32>
    %c0_14 = arith.constant 0 : index
    %c0_15 = arith.constant 0 : index
    %50 = vector.load %arg8[%c0_14, %c0_15] : memref<4x128xf32, #tpu.memory_space<vmem>>, vector<4x128xf32>
    %c0_16 = arith.constant 0 : index
    %c0_17 = arith.constant 0 : index
    %51 = vector.load %arg7[%c0_16, %c0_17] : memref<128x128xf32, #tpu.memory_space<vmem>>, vector<128x128xf32>
    %cst_18 = arith.constant dense<0.000000e+00> : vector<256x128xf32>
    %52 = tpu.matmul %49, %51, %cst_18 {dimension_numbers = #tpu.dot_dimension_numbers<[1], [0], [0], [1], [0, 0, 1, 1], [], []>} : vector<256x128xf32>, vector<128x128xf32>, vector<256x128xf32> -> vector<256x128xf32>
    %53 = vector.extract_strided_slice %50 {offsets = [1, 0], sizes = [1, 128], strides = [1, 1]} : vector<4x128xf32> to vector<1x128xf32>
    %54 = vector.broadcast %0 : f32 to vector<1x128xf32>
    %55 = arith.mulf %53, %54 : vector<1x128xf32>
    %56 = vector.extract_strided_slice %50 {offsets = [2, 0], sizes = [1, 128], strides = [1, 1]} : vector<4x128xf32> to vector<1x128xf32>
    %57 = arith.addf %55, %56 : vector<1x128xf32>
    %58 = arith.negf %57 : vector<1x128xf32>
    %59 = math.exp %58 : vector<1x128xf32>
    %cst_19 = arith.constant 1.000000e+00 : f32
    %60 = vector.broadcast %cst_19 : f32 to vector<1x128xf32>
    %61 = arith.addf %60, %59 : vector<1x128xf32>
    %62 = arith.divf %60, %61 : vector<1x128xf32>
    %63 = vector.extract_strided_slice %50 {offsets = [0, 0], sizes = [1, 128], strides = [1, 1]} : vector<4x128xf32> to vector<1x128xf32>
    %64 = arith.mulf %63, %62 : vector<1x128xf32>
    %65 = vector.extract_strided_slice %50 {offsets = [3, 0], sizes = [1, 128], strides = [1, 1]} : vector<4x128xf32> to vector<1x128xf32>
    %66 = vector.broadcast %0 : f32 to vector<1x128xf32>
    %67 = arith.mulf %65, %66 : vector<1x128xf32>
    %68 = arith.addf %64, %67 : vector<1x128xf32>
    %69 = vector.broadcast %62 : vector<1x128xf32> to vector<256x128xf32>
    %70 = arith.mulf %52, %69 : vector<256x128xf32>
    %71 = vector.broadcast %68 : vector<1x128xf32> to vector<256x128xf32>
    %72 = arith.addf %70, %71 : vector<256x128xf32>
    %c0_20 = arith.constant 0 : index
    %c0_21 = arith.constant 0 : index
    %73 = vector.load %arg9[%c0_20, %c0_21] : memref<256x128xf32, #tpu.memory_space<vmem>>, vector<256x128xf32>
    tpu.vector_store %arg9[%c0_20, %c0_21], %72 {strides = array<i32>} : memref<256x128xf32, #tpu.memory_space<vmem>>, vector<256x128xf32>,
    return
  }
  func.func @transform_0(%arg0: i32) -> (i32, i32) {
    %c0_i32 = arith.constant 0 : i32
    %c0_i32_0 = arith.constant 0 : i32
    %c0_i32_1 = arith.constant 0 : i32
    return %c0_i32, %c0_i32_0 : i32, i32
  }
  func.func @transform_1(%arg0: i32) -> (i32, i32) {
    %c0_i32 = arith.constant 0 : i32
    %c0_i32_0 = arith.constant 0 : i32
    return %arg0, %c0_i32 : i32, i32
  }
  func.func @transform_2(%arg0: i32) -> (i32, i32) {
    %c0_i32 = arith.constant 0 : i32
    %c0_i32_0 = arith.constant 0 : i32
    %c0_i32_1 = arith.constant 0 : i32
    return %c0_i32, %c0_i32_0 : i32, i32
  }
  func.func @transform_3(%arg0: i32) -> (i32, i32) {
    %c0_i32 = arith.constant 0 : i32
    %c0_i32_0 = arith.constant 0 : i32
    %c0_i32_1 = arith.constant 0 : i32
    return %c0_i32, %c0_i32_0 : i32, i32
  }
  func.func @transform_4(%arg0: i32) -> (i32, i32) {
    %c0_i32 = arith.constant 0 : i32
    %c0_i32_0 = arith.constant 0 : i32
    %c0_i32_1 = arith.constant 0 : i32
    return %c0_i32, %c0_i32_0 : i32, i32
  }
  func.func @transform_5(%arg0: i32) -> (i32, i32) {
    %c0_i32 = arith.constant 0 : i32
    %c0_i32_0 = arith.constant 0 : i32
    %c0_i32_1 = arith.constant 0 : i32
    return %c0_i32, %c0_i32_0 : i32, i32
  }
  func.func @transform_6(%arg0: i32) -> (i32, i32) {
    %c0_i32 = arith.constant 0 : i32
    %c0_i32_0 = arith.constant 0 : i32
    %c0_i32_1 = arith.constant 0 : i32
    return %c0_i32, %c0_i32_0 : i32, i32
  }
  func.func @transform_7(%arg0: i32) -> (i32, i32) {
    %c0_i32 = arith.constant 0 : i32
    %c0_i32_0 = arith.constant 0 : i32
    %c0_i32_1 = arith.constant 0 : i32
    return %c0_i32, %c0_i32_0 : i32, i32
  }
  func.func @transform_8(%arg0: i32) -> (i32, i32) {
    %c0_i32 = arith.constant 0 : i32
    %c0_i32_0 = arith.constant 0 : i32
    return %arg0, %c0_i32 : i32, i32
  }
}

</mosaic_0001>

<bundles_post_ra>
// kernel: odenet_forward.1
= control target key start
LH: loop header
LB: loop body
LE: loop exit
PB: predicated region body
PF: predicated region fallthrough
CT: control target
= control target key end

     0   :  { %s2209_s29 = smov 0   ;;  %s2721_s0 = inlined_call_operand.<no memory space> [shape: f32[1,1], index: 0, kind: input, shape index: {}]   ;;  %s2722_s1 = inlined_call_operand.vmem [shape: f32[512,128], index: 1, kind: input, shape index: {}]   ;;  %s2723_s2 = inlined_call_operand.vmem [shape: f32[128,128], index: 2, kind: input, shape index: {}]   ;;  %s2724_s3 = inlined_call_operand.vmem [shape: f32[4,128], index: 3, kind: input, shape index: {}]   ;;  %s2725_s4 = inlined_call_operand.vmem [shape: f32[128,128], index: 4, kind: input, shape index: {}]   ;;  %s2726_s5 = inlined_call_operand.vmem [shape: f32[4,128], index: 5, kind: input, shape index: {}]   ;;  %s2727_s6 = inlined_call_operand.vmem [shape: f32[128,128], index: 6, kind: input, shape index: {}]   ;;  %s2728_s7 = inlined_call_operand.vmem [shape: f32[4,128], index: 7, kind: input, shape index: {}]   ;;  %s2729_s8 = inlined_call_operand.vmem [shape: f32[512,128], index: 8, kind: output, shape index: {}]  }
   0x1   :  { %13 = sst [smem:[#allocation2]] %s2721_s0 }
   0x2 LB: > { %s1495_s30 = sadd.s32 4294967295, %s2159_s29   ;;  %p1499_p0 = scmp.ge.s32.totalorder %s2159_s29, 1  ;;  %s2159_s29 = sphi %s2209_s29, %s19_s29  }
   0x3   : > { %p264_p1 = scmp.lt.s32.totalorder %s2159_s29, 3 }
   0x5   : > { %p265_p2 = pnand %p1499_p0, %p264_p1 }
   0x6   : > { %v344_v0 = vld [vmem:[%s2723_s2] sm:$0xff] (!%p265_p2)  ;;  %v345_v1 = vld [vmem:[%s2723_s2 + $0x8] sm:$0xff] (!%p265_p2)  ;;  %v346_v2 = vld [vmem:[%s2723_s2 + $0x10] sm:$0xff] (!%p265_p2)  ;;  %s1500_s14 = sshll.u32 (!%p265_p2), %s1495_s30, 5  ;;  %s310_s17 = sld [smem:[#allocation2]] (!%p265_p2) }
   0x7   : > { %268 = sbr.rel (%p265_p2) target bundleno = 777 (0x309), region = 52  ;;  %v1893_v3 = vpack.c.bf16 (!%p265_p2), %v345_v1, %v344_v0  ;;  %v347_v4 = vld [vmem:[%s2723_s2 + $0x18] sm:$0xff] (!%p265_p2)  ;;  %p299_p3 = scmp.lt.s32.totalorder (!%p265_p2), %s1500_s14, 63  ;;  %v348_v6 = vld [vmem:[%s2723_s2 + $0x20] sm:$0xff] (!%p265_p2)  ;;  %v349_v7 = vld [vmem:[%s2723_s2 + $0x28] sm:$0xff] (!%p265_p2) }
   0x8   : > { %v1897_v5 = vpack.c.bf16 (!%p265_p2), %v347_v4, %v346_v2  ;;  %v1901_v8 = vpack.c.bf16 (!%p265_p2), %v349_v7, %v348_v6  ;;  %v350_v9 = vld [vmem:[%s2723_s2 + $0x30] sm:$0xff] (!%p265_p2)  ;;  %v351_v10 = vld [vmem:[%s2723_s2 + $0x38] sm:$0xff] (!%p265_p2)  ;;  %v352_v13 = vld [vmem:[%s2723_s2 + $0x40] sm:$0xff] (!%p265_p2) }
   0x9   : > { %1894 = vmatprep.subr.bf16.mxu0 (!%p265_p2), %v1893_v3  ;;  %1989 = vmatprep.subr.bf16.mxu1 (!%p265_p2), %v1893_v3  ;;  %v1905_v12 = vpack.c.bf16 (!%p265_p2), %v351_v10, %v350_v9  ;;  %v353_v14 = vld [vmem:[%s2723_s2 + $0x48] sm:$0xff] (!%p265_p2)  ;;  %v354_v17 = vld [vmem:[%s2723_s2 + $0x50] sm:$0xff] (!%p265_p2)  ;;  %v355_v18 = vld [vmem:[%s2723_s2 + $0x58] sm:$0xff] (!%p265_p2) }
   0xa   : > { %1896 = vmatpush3.bf16.msra.mxu0 (!%p265_p2), %v1893_v3  ;;  %1997 = vmatpush3.bf16.msra.mxu1 (!%p265_p2), %v1893_v3  ;;  %v1909_v16 = vpack.c.bf16 (!%p265_p2), %v353_v14, %v352_v13  ;;  %v1913_v19 = vpack.c.bf16 (!%p265_p2), %v355_v18, %v354_v17  ;;  %v356_v20 = vld [vmem:[%s2723_s2 + $0x60] sm:$0xff] (!%p265_p2)  ;;  %v357_v21 = vld [vmem:[%s2723_s2 + $0x68] sm:$0xff] (!%p265_p2)  ;;  %v358_v23 = vld [vmem:[%s2723_s2 + $0x70] sm:$0xff] (!%p265_p2) }
   0xb   : > { %1898 = vmatprep.subr.bf16.mxu0 (!%p265_p2), %v1897_v5  ;;  %1990 = vmatprep.subr.bf16.mxu1 (!%p265_p2), %v1897_v5  ;;  %v1917_v22 = vpack.c.bf16 (!%p265_p2), %v357_v21, %v356_v20  ;;  %v359_v24 = vld [vmem:[%s2723_s2 + $0x78] sm:$0xff] (!%p265_p2)  ;;  %v710_v26 = vld [vmem:[%s2725_s4] sm:$0xff] (!%p265_p2)  ;;  %v711_v27 = vld [vmem:[%s2725_s4 + $0x8] sm:$0xff] (!%p265_p2) }
   0xc   : > { %v1921_v25 = vpack.c.bf16 (!%p265_p2), %v359_v24, %v358_v23  ;;  %v1925_v28 = vpack.c.bf16 (!%p265_p2), %v711_v27, %v710_v26  ;;  %v712_v29 = vld [vmem:[%s2725_s4 + $0x10] sm:$0xff] (!%p265_p2)  ;;  %v713_v30 = vld [vmem:[%s2725_s4 + $0x18] sm:$0xff] (!%p265_p2)  ;;  %v714_v36 = vld [vmem:[%s2725_s4 + $0x20] sm:$0xff] (!%p265_p2)  ;;  %v2358_v17 = vstv (!%p265_p2), %s310_s17 }
   0xd   : > { %v1929_v35 = vpack.c.bf16 (!%p265_p2), %v713_v30, %v712_v29  ;;  %v715_v37 = vld [vmem:[%s2725_s4 + $0x28] sm:$0xff] (!%p265_p2)  ;;  %v716_v43 = vld [vmem:[%s2725_s4 + $0x30] sm:$0xff] (!%p265_p2)  ;;  %v717_v44 = vld [vmem:[%s2725_s4 + $0x38] sm:$0xff] (!%p265_p2) }
   0xe   : > { %s2731_s14 = smov (!%p299_p3, %s1500_s14), 63  ;;  %1900 = vmatpush3.bf16.msra.mxu0 %v1897_v5  ;;  %1998 = vmatpush3.bf16.msra.mxu1 %v1897_v5  ;;  %v1933_v42 = vpack.c.bf16 %v715_v37, %v714_v36  ;;  %v1937_v49 = vpack.c.bf16 %v717_v44, %v716_v43  ;;  %v718_v4 = vld [vmem:[%s2725_s4 + $0x40] sm:$0xff]  ;;  %v719_v5 = vld [vmem:[%s2725_s4 + $0x48] sm:$0xff]  ;;  %v720_v7 = vld [vmem:[%s2725_s4 + $0x50] sm:$0xff]  ;;  %v605_v37 = vlaneseq }
   0xf   : > { %s1501_s21 = sshll.u32 %s2731_s14, 3  ;;  %1902 = vmatprep.subr.bf16.mxu0 %v1901_v8  ;;  %1991 = vmatprep.subr.bf16.mxu1 %v1901_v8  ;;  %v1941_v6 = vpack.c.bf16 %v719_v5, %v718_v4  ;;  %v722_v10 = vld [vmem:[%s2725_s4 + $0x60] sm:$0xff]  ;;  %v724_v13 = vld [vmem:[%s2725_s4 + $0x70] sm:$0xff]  ;;  %v725_v14 = vld [vmem:[%s2725_s4 + $0x78] sm:$0xff] }
  0x10   : > { %s2249_s28 = scalar_lea.vmem %s2722_s1, %s1501_s21  ;;  %v1075_v21 = vld [vmem:[%s2727_s6] sm:$0xff]  ;;  %v1077_v23 = vld [vmem:[%s2727_s6 + $0x10] sm:$0xff]  ;;  %s2621_s18 = scalar_lea.vmem %s2729_s8, %s1501_s21 }
  0x11   : > { %v311_v11 = vld [vmem:[%s2249_s28] sm:$0xff]  ;;  %v312_v31 = vld [vmem:[%s2249_s28 + $0x8] sm:$0xff]  ;;  %v313_v32 = vld [vmem:[%s2249_s28 + $0x10] sm:$0xff] }
  0x12   : > { %1685 = vmatprep.mubr.f32.mxu0 %v311_v11  ;;  %1904 = vmatpush3.bf16.msra.mxu0 %v1901_v8  ;;  %v327_v15 = vld [vmem:[%s2249_s28 + $0x80] sm:$0xff]  ;;  %v328_v33 = vld [vmem:[%s2249_s28 + $0x88] sm:$0xff]  ;;  %v329_v34 = vld [vmem:[%s2249_s28 + $0x90] sm:$0xff] }
  0x13   : > { %1906 = vmatprep.subr.bf16.mxu0 %v1905_v12  ;;  %1999 = vmatpush3.bf16.msra.mxu1 %v1901_v8  ;;  %v314_v38 = vld [vmem:[%s2249_s28 + $0x18] sm:$0xff]  ;;  %v315_v39 = vld [vmem:[%s2249_s28 + $0x20] sm:$0xff]  ;;  %v316_v45 = vld [vmem:[%s2249_s28 + $0x28] sm:$0xff] }
  0x14   : > { %1992 = vmatprep.subr.bf16.mxu1 %v1905_v12  ;;  %1709 = vmatprep.mubr.f32.mxu1 %v327_v15  ;;  %v330_v40 = vld [vmem:[%s2249_s28 + $0x98] sm:$0xff]  ;;  %v331_v41 = vld [vmem:[%s2249_s28 + $0xa0] sm:$0xff]  ;;  %v317_v46 = vld [vmem:[%s2249_s28 + $0x30] sm:$0xff]  ;;  %v1953_v15 = vpack.c.bf16 %v725_v14, %v724_v13 }
  0x15   : > { %v332_v47 = vld [vmem:[%s2249_s28 + $0xa8] sm:$0xff]  ;;  %v333_v48 = vld [vmem:[%s2249_s28 + $0xb0] sm:$0xff]  ;;  %v318_v50 = vld [vmem:[%s2249_s28 + $0x38] sm:$0xff] }
  0x16   : > { %1908 = vmatpush3.bf16.msra.mxu0 %v1905_v12  ;;  %v319_v51 = vld [vmem:[%s2249_s28 + $0x40] sm:$0xff]  ;;  %v334_v52 = vld [vmem:[%s2249_s28 + $0xb8] sm:$0xff]  ;;  %v320_v54 = vld [vmem:[%s2249_s28 + $0x48] sm:$0xff] }
  0x17   : > { %1910 = vmatprep.subr.bf16.mxu0 %v1909_v16  ;;  %2000 = vmatpush3.bf16.msra.mxu1 %v1905_v12  ;;  %v335_v53 = vld [vmem:[%s2249_s28 + $0xc0] sm:$0xff]  ;;  %v321_v55 = vld [vmem:[%s2249_s28 + $0x50] sm:$0xff]  ;;  %v336_v56 = vld [vmem:[%s2249_s28 + $0xc8] sm:$0xff] }
  0x18   : > { %1993 = vmatprep.subr.bf16.mxu1 %v1909_v16  ;;  %v337_v57 = vld [vmem:[%s2249_s28 + $0xd0] sm:$0xff]  ;;  %v322_v58 = vld [vmem:[%s2249_s28 + $0x58] sm:$0xff]  ;;  %v323_v59 = vld [vmem:[%s2249_s28 + $0x60] sm:$0xff] }
  0x19   : > { %v338_v60 = vld [vmem:[%s2249_s28 + $0xd8] sm:$0xff]  ;;  %v339_v61 = vld [vmem:[%s2249_s28 + $0xe0] sm:$0xff]  ;;  %v324_v62 = vld [vmem:[%s2249_s28 + $0x68] sm:$0xff] }
  0x1a   : > { %1912 = vmatpush3.bf16.msra.mxu0 %v1909_v16  ;;  %v325_v63 = vld [vmem:[%s2249_s28 + $0x70] sm:$0xff]  ;;  %v340_v0 = vld [vmem:[%s2249_s28 + $0xe8] sm:$0xff]  ;;  %v326_v2 = vld [vmem:[%s2249_s28 + $0x78] sm:$0xff] }
  0x1b   : > { %1914 = vmatprep.subr.bf16.mxu0 %v1913_v19  ;;  %2001 = vmatpush3.bf16.msra.mxu1 %v1909_v16  ;;  %v341_v1 = vld [vmem:[%s2249_s28 + $0xf0] sm:$0xff]  ;;  %v342_v3 = vld [vmem:[%s2249_s28 + $0xf8] sm:$0xff]  ;;  %v723_v11 = vld [vmem:[%s2725_s4 + $0x68] sm:$0xff] }
  0x1c   : > { %1994 = vmatprep.subr.bf16.mxu1 %v1913_v19  ;;  %v721_v8 = vld [vmem:[%s2725_s4 + $0x58] sm:$0xff]  ;;  %v1949_v12 = vpack.c.bf16 %v723_v11, %v722_v10  ;;  %v343_v16 = vld [vmem:[%s2724_s3] sm:$0xf] }
  0x1d   : > { %v1945_v9 = vpack.c.bf16 %v721_v8, %v720_v7  ;;  %v586_v18 = vmul.f32 %v2358_v17, %v343_v16  ;;  %v1079_v27 = vld [vmem:[%s2727_s6 + $0x20] sm:$0xff] }
  0x1e   : > { %1916 = vmatpush3.bf16.msra.mxu0 %v1913_v19 }
  0x1f   : > { %1918 = vmatprep.subr.bf16.mxu0 %v1917_v22  ;;  %2002 = vmatpush3.bf16.msra.mxu1 %v1913_v19  ;;  %v588_v19 = vrot.slane %v343_v16, 1 }
  0x20   : > { %1995 = vmatprep.subr.bf16.mxu1 %v1917_v22 }
  0x21   : > { %v590_v20 = vadd.f32 %v588_v19, %v586_v18 }
  0x22   : > { %1920 = vmatpush3.bf16.msra.mxu0 %v1917_v22 }
  0x23   : > { %1922 = vmatprep.subr.bf16.mxu0 %v1921_v25  ;;  %2003 = vmatpush3.bf16.msra.mxu1 %v1917_v22  ;;  %v1076_v22 = vld [vmem:[%s2727_s6 + $0x8] sm:$0xff]  ;;  %v1504_v29 = vmul.f32 -1.442695, %v590_v20 }
  0x24   : > { %1996 = vmatprep.subr.bf16.mxu1 %v1921_v25  ;;  %v1957_v24 = vpack.c.bf16 %v1076_v22, %v1075_v21 }
  0x25   : > { %2013 = vpow2.f32 %v1504_v29 }
  0x26   : > { %1924 = vmatpush3.bf16.msra.mxu0 %v1921_v25 }
  0x27   : > { %2004 = vmatpush3.bf16.msra.mxu1 %v1921_v25  ;;  %v1078_v25 = vld [vmem:[%s2727_s6 + $0x18] sm:$0xff]  ;;  %1958 = vmatprep.subr.bf16.mxu0 %v1957_v24 }
  0x28   : > { %1926 = vmatprep.subr.bf16.mxu1 %v1925_v28  ;;  %v1961_v26 = vpack.c.bf16 %v1078_v25, %v1077_v23 }
  0x29   : > { %1686 = vmatmul.mubr.f32.vlgmr.msra.gmra.mrb[0].mxu0 %v312_v31  ;;  %v1081_v31 = vld [vmem:[%s2727_s6 + $0x30] sm:$0xff] }
  0x2a   : > { %1688 = vmatprep.mubr.f32.mxu0 %v313_v32  ;;  %1710 = vmatmul.mubr.f32.vlgmr.msra.gmra.mrb[0].mxu1 %v328_v33  ;;  %v1082_v32 = vld [vmem:[%s2727_s6 + $0x38] sm:$0xff] }
  0x2b   : > { %1712 = vmatprep.mubr.f32.mxu1 %v329_v34  ;;  %1928 = vmatpush3.bf16.msra.mxu1 %v1925_v28  ;;  %v1080_v28 = vld [vmem:[%s2727_s6 + $0x28] sm:$0xff]  ;;  %v1969_v33 = vpack.c.bf16 %v1082_v32, %v1081_v31 }
  0x2c   : > { %1930 = vmatprep.subr.bf16.mxu1 %v1929_v35  ;;  %1960 = vmatpush3.bf16.msra.mxu0 %v1957_v24  ;;  %v1965_v30 = vpack.c.bf16 %v1080_v28, %v1079_v27 }
  0x2d   : > { %1689 = vmatmul.mubr.f32.gmra.mrb[2].mxu0 %v314_v38  ;;  %1962 = vmatprep.subr.bf16.mxu0 %v1961_v26 }
  0x2e   : > { %1691 = vmatprep.mubr.f32.mxu0 %v315_v39  ;;  %1713 = vmatmul.mubr.f32.gmra.mrb[2].mxu1 %v330_v40  ;;  %v606_v39 = vshrl.u32 %v605_v37, 7 }
  0x2f   : > { %1715 = vmatprep.mubr.f32.mxu1 %v331_v41  ;;  %1932 = vmatpush3.bf16.msra.mxu1 %v1929_v35  ;;  %v2014_v34 = vpop.eup %2013  ;;  %v602_v41 = vrot.slane %v586_v18, 3 }
  0x30   : > { %1934 = vmatprep.subr.bf16.mxu1 %v1933_v42  ;;  %1964 = vmatpush3.bf16.msra.mxu0 %v1961_v26  ;;  %v594_v35 = vadd.f32 1.0, %v2014_v34  ;;  %v2387_v44 = vsub.s32 0, %v606_v39 }
  0x31   : > { %1692 = vmatmul.mubr.f32.gmra.mrb[4].mxu0 %v316_v45  ;;  %1966 = vmatprep.subr.bf16.mxu0 %v1965_v30 }
  0x32   : > { %1694 = vmatprep.mubr.f32.mxu0 %v317_v46  ;;  %1716 = vmatmul.mubr.f32.gmra.mrb[4].mxu1 %v332_v47  ;;  %2015 = vrcp.f32 %v594_v35 }
  0x33   : > { %1718 = vmatprep.mubr.f32.mxu1 %v333_v48  ;;  %1936 = vmatpush3.bf16.msra.mxu1 %v1933_v42  ;;  %v2385_v42 = vsub.s32 1, %v606_v39 }
  0x34   : > { %1938 = vmatprep.subr.bf16.mxu1 %v1937_v49  ;;  %1968 = vmatpush3.bf16.msra.mxu0 %v1965_v30 }
  0x35   : > { %1695 = vmatmul.mubr.f32.gmra.mrb[6].mxu0 %v318_v50  ;;  %1970 = vmatprep.subr.bf16.mxu0 %v1969_v33 }
  0x36   : > { %1697 = vmatprep.mubr.f32.mxu0 %v319_v51  ;;  %1719 = vmatmul.mubr.f32.gmra.mrb[6].mxu1 %v334_v52 }
  0x37   : > { %1721 = vmatprep.mubr.f32.mxu1 %v335_v53  ;;  %1940 = vmatpush3.bf16.msra.mxu1 %v1937_v49 }
  0x38   : > { %1942 = vmatprep.subr.bf16.mxu1 %v1941_v6  ;;  %1972 = vmatpush3.bf16.msra.mxu0 %v1969_v33 }
  0x39   : > { %1698 = vmatmul.mubr.f32.gmra.mrb[8].mxu0 %v320_v54 }
  0x3a   : > { %1700 = vmatprep.mubr.f32.mxu0 %v321_v55  ;;  %1722 = vmatmul.mubr.f32.gmra.mrb[8].mxu1 %v336_v56 }
  0x3b   : > { %1724 = vmatprep.mubr.f32.mxu1 %v337_v57  ;;  %1944 = vmatpush3.bf16.msra.mxu1 %v1941_v6 }
  0x3c   : > { %1946 = vmatprep.subr.bf16.mxu1 %v1945_v9  ;;  %v2016_v36 = vpop.eup %2015 }
  0x3d   : > { %1701 = vmatmul.mubr.f32.gmra.mrb[10].mxu0 %v322_v58  ;;  %v598_v38 = vrot.slane %v2016_v36, 1  ;;  %v2390_v45 = vrot.slane %v2016_v36, %v2385_v42 }
  0x3e   : > { %1703 = vmatprep.mubr.f32.mxu0 %v323_v59  ;;  %1725 = vmatmul.mubr.f32.gmra.mrb[10].mxu1 %v338_v60 }
  0x3f   : > { %1727 = vmatprep.mubr.f32.mxu1 %v339_v61  ;;  %1948 = vmatpush3.bf16.msra.mxu1 %v1945_v9  ;;  %v600_v40 = vmul.f32 %v598_v38, %v343_v16 }
  0x40   : > { %1950 = vmatprep.subr.bf16.mxu1 %v1949_v12 }
  0x41   : > { %1704 = vmatmul.mubr.f32.gmra.mrb[12].mxu0 %v324_v62  ;;  %v604_v43 = vadd.f32 %v602_v41, %v600_v40 }
  0x42   : > { %1706 = vmatprep.mubr.f32.mxu0 %v325_v63  ;;  %1728 = vmatmul.mubr.f32.gmra.mrb[12].mxu1 %v340_v0 }
  0x43   : > { %1730 = vmatprep.mubr.f32.mxu1 %v341_v1  ;;  %1952 = vmatpush3.bf16.msra.mxu1 %v1949_v12  ;;  %v2393_v46 = vrot.slane %v604_v43, %v2387_v44 }
  0x44   : > { %1954 = vmatprep.subr.bf16.mxu1 %v1953_v15 }
  0x45   : > { %1707 = vmatmul.mubr.f32.gmra.mrb[14].mxu0 %v326_v2 }
  0x46   : > { %1731 = vmatmul.mubr.f32.gmra.mrb[14].mxu1 %v342_v3 }
  0x47   : > { %1956 = vmatpush3.bf16.msra.mxu1 %v1953_v15 }
  0xfc   : > { %v1687_v47 = vpop.f32.mrb[0].mxu0 }
  0xfd   : > { %v610_v48 = vmul.f32 %v1687_v47, %v2390_v45  ;;  %v426_v49 = vpop.f32.mrb[1].mxu0  ;;  %v2396_v50 = vpop.f32.mrb[0].mxu1 }
  0xfe   : > { %v609_v51 = vmul.f32 %v2390_v45, %v426_v49  ;;  %v2399_v52 = vpop.f32.mrb[1].mxu1 }
  0xff   : > { %v646_v53 = vadd.f32 %v2393_v46, %v610_v48  ;;  %v625_v41 = vmul.f32 %v2390_v45, %v2399_v52 }
 0x100   : > { %v645_v54 = vadd.f32 %v2393_v46, %v609_v51  ;;  %v1690_v55 = vpop.f32.mrb[2].mxu0 }
 0x101   : > { %v612_v56 = vmul.f32 %v1690_v55, %v2390_v45  ;;  %v436_v57 = vpop.f32.mrb[3].mxu0  ;;  %v2404_v58 = vpop.f32.mrb[2].mxu1  ;;  %v661_v52 = vadd.f32 %v2393_v46, %v625_v41 }
 0x102   : > { %2017 = vtanh.f32 %v645_v54  ;;  %v611_v59 = vmul.f32 %v2390_v45, %v436_v57  ;;  %v2407_v60 = vpop.f32.mrb[3].mxu1 }
 0x103   : > { %2019 = vtanh.f32 %v646_v53  ;;  %v648_v61 = vadd.f32 %v2393_v46, %v612_v56 }
 0x104   : > { %v647_v62 = vadd.f32 %v2393_v46, %v611_v59  ;;  %v1693_v63 = vpop.f32.mrb[4].mxu0 }
 0x105   : > { %v614_v0 = vmul.f32 %v1693_v63, %v2390_v45  ;;  %v446_v1 = vpop.f32.mrb[5].mxu0  ;;  %v2412_v2 = vpop.f32.mrb[4].mxu1 }
 0x106   : > { %2021 = vtanh.f32 %v647_v62  ;;  %v613_v3 = vmul.f32 %v2390_v45, %v446_v1  ;;  %v2415_v4 = vpop.f32.mrb[5].mxu1  ;;  %v627_v62 = vmul.f32 %v2390_v45, %v2407_v60  ;;  %v626_v1 = vmul.f32 %v2396_v50, %v2390_v45 }
 0x107   : > { %2023 = vtanh.f32 %v648_v61  ;;  %v650_v5 = vadd.f32 %v2393_v46, %v614_v0  ;;  %v629_v60 = vmul.f32 %v2390_v45, %v2415_v4  ;;  %v630_v4 = vmul.f32 %v2412_v2, %v2390_v45 }
 0x108   : > { %v649_v6 = vadd.f32 %v2393_v46, %v613_v3  ;;  %v1696_v7 = vpop.f32.mrb[6].mxu0 }
 0x109   : > { %v616_v8 = vmul.f32 %v1696_v7, %v2390_v45  ;;  %v456_v9 = vpop.f32.mrb[7].mxu0  ;;  %v2420_v10 = vpop.f32.mrb[6].mxu1  ;;  %v663_v7 = vadd.f32 %v2393_v46, %v627_v62  ;;  %v1086_v62 = vld [vmem:[%s2727_s6 + $0x58] sm:$0xff] }
 0x10a   : > { %2025 = vtanh.f32 %v649_v6  ;;  %v615_v11 = vmul.f32 %v2390_v45, %v456_v9  ;;  %v2423_v12 = vpop.f32.mrb[7].mxu1  ;;  %v628_v9 = vmul.f32 %v2404_v58, %v2390_v45 }
 0x10b   : > { %2027 = vtanh.f32 %v650_v5  ;;  %v652_v13 = vadd.f32 %v2393_v46, %v616_v8  ;;  %v662_v8 = vadd.f32 %v2393_v46, %v626_v1  ;;  %v1088_v1 = vld [vmem:[%s2727_s6 + $0x68] sm:$0xff] }
 0x10c   : > { %v2018_v14 = vpop.eup %2017  ;;  %v651_v15 = vadd.f32 %v2393_v46, %v615_v11  ;;  %v1699_v16 = vpop.f32.mrb[8].mxu0 }
 0x10d   : > { %v2020_v18 = vpop.eup %2019  ;;  %v618_v19 = vmul.f32 %v1699_v16, %v2390_v45  ;;  %v466_v20 = vpop.f32.mrb[9].mxu0  ;;  %1765 = vmatprep.mubr.f32.mxu1 %v2018_v14  ;;  %v631_v14 = vmul.f32 %v2390_v45, %v2423_v12  ;;  %v666_v12 = vadd.f32 %v2393_v46, %v630_v4 }
 0x10e   : > { %v2428_v21 = vpop.f32.mrb[8].mxu1  ;;  %2029 = vtanh.f32 %v651_v15  ;;  %v617_v22 = vmul.f32 %v2390_v45, %v466_v20  ;;  %1766 = vmatmul.mubr.f32.vlgmr.msra.gmra.mrb[16].mxu1 %v2020_v18  ;;  %v664_v15 = vadd.f32 %v2393_v46, %v628_v9 }
 0x10f   : > { %v2431_v23 = vpop.f32.mrb[9].mxu1  ;;  %2031 = vtanh.f32 %v652_v13  ;;  %v654_v24 = vadd.f32 %v2393_v46, %v618_v19  ;;  %v665_v13 = vadd.f32 %v2393_v46, %v629_v60  ;;  %v667_v58 = vadd.f32 %v2393_v46, %v631_v14  ;;  %v709_v60 = vld [vmem:[%s2726_s5] sm:$0xf] }
 0x110   : > { %v2022_v25 = vpop.eup %2021  ;;  %v653_v26 = vadd.f32 %v2393_v46, %v617_v22  ;;  %v1702_v27 = vpop.f32.mrb[10].mxu0  ;;  %v633_v19 = vmul.f32 %v2390_v45, %v2431_v23  ;;  %v632_v22 = vmul.f32 %v2420_v10, %v2390_v45  ;;  %v953_v9 = vrot.slane %v709_v60, 1 }
 0x111   : > { %v2024_v28 = vpop.eup %2023  ;;  %v620_v29 = vmul.f32 %v1702_v27, %v2390_v45  ;;  %v476_v30 = vpop.f32.mrb[11].mxu0  ;;  %1768 = vmatprep.mubr.f32.mxu1 %v2022_v25  ;;  %v634_v27 = vmul.f32 %v2428_v21, %v2390_v45 }
 0x112   : > { %v2436_v31 = vpop.f32.mrb[10].mxu1  ;;  %2033 = vtanh.f32 %v653_v26  ;;  %v619_v32 = vmul.f32 %v2390_v45, %v476_v30  ;;  %1769 = vmatmul.mubr.f32.gmra.mrb[18].mxu1 %v2024_v28  ;;  %v669_v2 = vadd.f32 %v2393_v46, %v633_v19  ;;  %v668_v23 = vadd.f32 %v2393_v46, %v632_v22 }
 0x113   : > { %v2439_v33 = vpop.f32.mrb[11].mxu1  ;;  %2035 = vtanh.f32 %v654_v24  ;;  %v656_v34 = vadd.f32 %v2393_v46, %v620_v29 }
 0x114   : > { %v2026_v35 = vpop.eup %2025  ;;  %v655_v36 = vadd.f32 %v2393_v46, %v619_v32  ;;  %v1705_v37 = vpop.f32.mrb[12].mxu0  ;;  %v635_v26 = vmul.f32 %v2390_v45, %v2439_v33  ;;  %v670_v32 = vadd.f32 %v2393_v46, %v634_v27  ;;  %v636_v33 = vmul.f32 %v2436_v31, %v2390_v45 }
 0x115   : > { %v2028_v38 = vpop.eup %2027  ;;  %v622_v39 = vmul.f32 %v1705_v37, %v2390_v45  ;;  %v486_v40 = vpop.f32.mrb[13].mxu0  ;;  %1771 = vmatprep.mubr.f32.mxu1 %v2026_v35 }
 0x116   : > { %v2446_v43 = vpop.f32.mrb[12].mxu1  ;;  %2037 = vtanh.f32 %v655_v36  ;;  %v621_v47 = vmul.f32 %v2390_v45, %v486_v40  ;;  %1772 = vmatmul.mubr.f32.gmra.mrb[20].mxu1 %v2028_v38  ;;  %v671_v10 = vadd.f32 %v2393_v46, %v635_v26  ;;  %v672_v37 = vadd.f32 %v2393_v46, %v636_v33 }
 0x117   : > { %v2449_v48 = vpop.f32.mrb[13].mxu1  ;;  %2039 = vtanh.f32 %v656_v34  ;;  %v658_v49 = vadd.f32 %v2393_v46, %v622_v39  ;;  %v638_v38 = vmul.f32 %v2446_v43, %v2390_v45 }
 0x118   : > { %v2030_v51 = vpop.eup %2029  ;;  %v657_v53 = vadd.f32 %v2393_v46, %v621_v47  ;;  %v1708_v54 = vpop.f32.mrb[14].mxu0  ;;  %v637_v30 = vmul.f32 %v2390_v45, %v2449_v48 }
 0x119   : > { %v2032_v55 = vpop.eup %2031  ;;  %v624_v56 = vmul.f32 %v1708_v54, %v2390_v45  ;;  %v496_v57 = vpop.f32.mrb[15].mxu0  ;;  %1774 = vmatprep.mubr.f32.mxu1 %v2030_v51  ;;  %v674_v41 = vadd.f32 %v2393_v46, %v638_v38 }
 0x11a   : > { %v2455_v59 = vpop.f32.mrb[14].mxu1  ;;  %2041 = vtanh.f32 %v657_v53  ;;  %v623_v61 = vmul.f32 %v2390_v45, %v496_v57  ;;  %1775 = vmatmul.mubr.f32.gmra.mrb[22].mxu1 %v2032_v55  ;;  %v673_v21 = vadd.f32 %v2393_v46, %v637_v30 }
 0x11b   : > { %v2460_v63 = vpop.f32.mrb[15].mxu1  ;;  %2043 = vtanh.f32 %v658_v49  ;;  %v660_v0 = vadd.f32 %v2393_v46, %v624_v56  ;;  %v640_v47 = vmul.f32 %v2455_v59, %v2390_v45 }
 0x11c   : > { %v2034_v3 = vpop.eup %2033  ;;  %v659_v5 = vadd.f32 %v2393_v46, %v623_v61  ;;  %2045 = vtanh.f32 %v661_v52  ;;  %v639_v36 = vmul.f32 %v2390_v45, %v2460_v63  ;;  %v1084_v52 = vld [vmem:[%s2727_s6 + $0x48] sm:$0xff]  ;;  %v1085_v61 = vld [vmem:[%s2727_s6 + $0x50] sm:$0xff] }
 0x11d   : > { %v2036_v6 = vpop.eup %2035  ;;  %1777 = vmatprep.mubr.f32.mxu1 %v2034_v3  ;;  %v676_v43 = vadd.f32 %v2393_v46, %v640_v47  ;;  %v1977_v63 = vpack.c.bf16 %v1086_v62, %v1085_v61 }
 0x11e   : > { %2047 = vtanh.f32 %v659_v5  ;;  %1778 = vmatmul.mubr.f32.gmra.mrb[24].mxu1 %v2036_v6  ;;  %v675_v31 = vadd.f32 %v2393_v46, %v639_v36  ;;  %v1083_v46 = vld [vmem:[%s2727_s6 + $0x40] sm:$0xff]  ;;  %v1089_v5 = vld [vmem:[%s2727_s6 + $0x70] sm:$0xff]  ;;  %v1090_v6 = vld [vmem:[%s2727_s6 + $0x78] sm:$0xff] }
 0x11f   : > { %2049 = vtanh.f32 %v660_v0  ;;  %v1973_v59 = vpack.c.bf16 %v1084_v52, %v1083_v46  ;;  %v1087_v0 = vld [vmem:[%s2727_s6 + $0x60] sm:$0xff] }
 0x120   : > { %v2038_v50 = vpop.eup %2037  ;;  %2051 = vtanh.f32 %v663_v7  ;;  %v1981_v3 = vpack.c.bf16 %v1088_v1, %v1087_v0  ;;  %v1985_v7 = vpack.c.bf16 %v1090_v6, %v1089_v5 }
 0x121   : > { %v2040_v11 = vpop.eup %2039  ;;  %1780 = vmatprep.mubr.f32.mxu1 %v2038_v50  ;;  %2053 = vtanh.f32 %v662_v8  ;;  %1974 = vmatprep.subr.bf16.mxu0 %v1973_v59  ;;  %v951_v8 = vmul.f32 %v709_v60, %v2358_v17 }
 0x122   : > { %1781 = vmatmul.mubr.f32.gmra.mrb[26].mxu1 %v2040_v11  ;;  %2055 = vtanh.f32 %v665_v13  ;;  %1976 = vmatpush3.bf16.msra.mxu0 %v1973_v59 }
 0x123   : > { %2057 = vtanh.f32 %v664_v15  ;;  %1978 = vmatprep.subr.bf16.mxu0 %v1977_v63  ;;  %v955_v50 = vadd.f32 %v953_v9, %v951_v8 }
 0x124   : > { %v2042_v16 = vpop.eup %2041  ;;  %2059 = vtanh.f32 %v667_v58 }
 0x125   : > { %v2044_v18 = vpop.eup %2043  ;;  %1783 = vmatprep.mubr.f32.mxu1 %v2042_v16  ;;  %2061 = vtanh.f32 %v666_v12  ;;  %v1505_v11 = vmul.f32 -1.442695, %v955_v50 }
 0x126   : > { %1784 = vmatmul.mubr.f32.gmra.mrb[28].mxu1 %v2044_v18  ;;  %v2046_v20 = vpop.eup %2045  ;;  %2063 = vtanh.f32 %v669_v2  ;;  %1980 = vmatpush3.bf16.msra.mxu0 %v1977_v63  ;;  %v967_v18 = vrot.slane %v951_v8, 3 }
 0x127   : > { %2065 = vtanh.f32 %v668_v23  ;;  %1982 = vmatprep.subr.bf16.mxu0 %v1981_v3 }
 0x128   : > { %v2048_v24 = vpop.eup %2047  ;;  %2067 = vtanh.f32 %v671_v10 }
 0x129   : > { %v2050_v25 = vpop.eup %2049  ;;  %1786 = vmatprep.mubr.f32.mxu1 %v2048_v24  ;;  %2069 = vtanh.f32 %v670_v32 }
 0x12a   : > { %1787 = vmatmul.mubr.f32.gmra.mrb[30].mxu1 %v2050_v25  ;;  %v2052_v28 = vpop.eup %2051  ;;  %2071 = vtanh.f32 %v673_v21  ;;  %1984 = vmatpush3.bf16.msra.mxu0 %v1981_v3 }
 0x12b   : > { %1789 = vmatprep.mubr.f32.mxu1 %v2046_v20  ;;  %v2054_v29 = vpop.eup %2053  ;;  %2073 = vtanh.f32 %v672_v37  ;;  %1986 = vmatprep.subr.bf16.mxu0 %v1985_v7 }
 0x12c   : > { %v2056_v34 = vpop.eup %2055  ;;  %2075 = vtanh.f32 %v675_v31 }
 0x12d   : > { %v2058_v35 = vpop.eup %2057  ;;  %2077 = vtanh.f32 %v674_v41 }
 0x12e   : > { %1790 = vmatmul.mubr.f32.gmra.mrb[32].mxu1 %v2054_v29  ;;  %v2060_v39 = vpop.eup %2059  ;;  %2079 = vtanh.f32 %v676_v43  ;;  %1988 = vmatpush3.bf16.msra.mxu0 %v1985_v7 }
 0x12f   : > { %1792 = vmatprep.mubr.f32.mxu1 %v2052_v28  ;;  %v2062_v40 = vpop.eup %2061  ;;  %2081 = vpow2.f32 %v1505_v11 }
 0x130   : > { %v2064_v48 = vpop.eup %2063 }
 0x131   : > { %v2066_v49 = vpop.eup %2065 }
 0x132   : > { %1793 = vmatmul.mubr.f32.gmra.mrb[34].mxu1 %v2058_v35  ;;  %v2068_v51 = vpop.eup %2067 }
 0x133   : > { %1795 = vmatprep.mubr.f32.mxu1 %v2056_v34  ;;  %v2070_v53 = vpop.eup %2069 }
 0x134   : > { %v2072_v54 = vpop.eup %2071 }
 0x135   : > { %v2074_v55 = vpop.eup %2073 }
 0x136   : > { %1796 = vmatmul.mubr.f32.gmra.mrb[36].mxu1 %v2062_v40  ;;  %v2076_v56 = vpop.eup %2075 }
 0x137   : > { %1798 = vmatprep.mubr.f32.mxu1 %v2060_v39  ;;  %v2078_v45 = vpop.eup %2077 }
 0x138   : > { %v2080_v57 = vpop.eup %2079 }
 0x139   : > { %v2082_v13 = vpop.eup %2081 }
 0x13a   : > { %1799 = vmatmul.mubr.f32.gmra.mrb[38].mxu1 %v2066_v49  ;;  %v959_v14 = vadd.f32 1.0, %v2082_v13 }
 0x13b   : > { %1801 = vmatprep.mubr.f32.mxu1 %v2064_v48 }
 0x13c   : > { %2083 = vrcp.f32 %v959_v14 }
 0x13e   : > { %1802 = vmatmul.mubr.f32.gmra.mrb[40].mxu1 %v2070_v53 }
 0x13f   : > { %1804 = vmatprep.mubr.f32.mxu1 %v2068_v51 }
 0x142   : > { %1805 = vmatmul.mubr.f32.gmra.mrb[42].mxu1 %v2074_v55 }
 0x143   : > { %1807 = vmatprep.mubr.f32.mxu1 %v2072_v54 }
 0x146   : > { %1808 = vmatmul.mubr.f32.gmra.mrb[44].mxu1 %v2078_v45  ;;  %v2084_v15 = vpop.eup %2083 }
 0x147   : > { %1810 = vmatprep.mubr.f32.mxu1 %v2076_v56  ;;  %v963_v4 = vrot.slane %v2084_v15, 1  ;;  %v2536_v19 = vrot.slane %v2084_v15, %v2385_v42 }
 0x149   : > { %v965_v16 = vmul.f32 %v963_v4, %v709_v60 }
 0x14a   : > { %1811 = vmatmul.mubr.f32.gmra.mrb[46].mxu1 %v2080_v57 }
 0x14b   : > { %v969_v58 = vadd.f32 %v967_v18, %v965_v16 }
 0x14d   : > { %v2539_v20 = vrot.slane %v969_v58, %v2387_v44 }
 0x1e1   : > { %v1767_v12 = vpop.f32.mrb[16].mxu1 }
 0x1e2   : > { %v975_v22 = vmul.f32 %v1767_v12, %v2536_v19  ;;  %v792_v24 = vpop.f32.mrb[17].mxu1 }
 0x1e3   : > { %v974_v25 = vmul.f32 %v2536_v19, %v792_v24 }
 0x1e4   : > { %v1011_v2 = vadd.f32 %v2539_v20, %v975_v22 }
 0x1e5   : > { %v1010_v26 = vadd.f32 %v2539_v20, %v974_v25  ;;  %v1770_v23 = vpop.f32.mrb[18].mxu1 }
 0x1e6   : > { %v977_v27 = vmul.f32 %v1770_v23, %v2536_v19  ;;  %v802_v28 = vpop.f32.mrb[19].mxu1 }
 0x1e7   : > { %2085 = vtanh.f32 %v1010_v26  ;;  %v976_v29 = vmul.f32 %v2536_v19, %v802_v28 }
 0x1e8   : > { %2087 = vtanh.f32 %v1011_v2  ;;  %v1013_v10 = vadd.f32 %v2539_v20, %v977_v27 }
 0x1e9   : > { %v1012_v30 = vadd.f32 %v2539_v20, %v976_v29  ;;  %v1773_v32 = vpop.f32.mrb[20].mxu1 }
 0x1ea   : > { %v979_v33 = vmul.f32 %v1773_v32, %v2536_v19  ;;  %v812_v34 = vpop.f32.mrb[21].mxu1 }
 0x1eb   : > { %2089 = vtanh.f32 %v1012_v30  ;;  %v978_v35 = vmul.f32 %v2536_v19, %v812_v34 }
 0x1ec   : > { %2091 = vtanh.f32 %v1013_v10  ;;  %v1015_v21 = vadd.f32 %v2539_v20, %v979_v33 }
 0x1ed   : > { %v1014_v36 = vadd.f32 %v2539_v20, %v978_v35  ;;  %v1776_v37 = vpop.f32.mrb[22].mxu1 }
 0x1ee   : > { %v981_v38 = vmul.f32 %v1776_v37, %v2536_v19  ;;  %v822_v39 = vpop.f32.mrb[23].mxu1 }
 0x1ef   : > { %2093 = vtanh.f32 %v1014_v36  ;;  %v980_v40 = vmul.f32 %v2536_v19, %v822_v39 }
 0x1f0   : > { %2095 = vtanh.f32 %v1015_v21  ;;  %v1017_v31 = vadd.f32 %v2539_v20, %v981_v38 }
 0x1f1   : > { %v2086_v41 = vpop.eup %2085  ;;  %v1016_v47 = vadd.f32 %v2539_v20, %v980_v40  ;;  %v1779_v48 = vpop.f32.mrb[24].mxu1 }
 0x1f2   : > { %v2088_v49 = vpop.eup %2087  ;;  %v983_v43 = vmul.f32 %v1779_v48, %v2536_v19  ;;  %v832_v51 = vpop.f32.mrb[25].mxu1  ;;  %1845 = vmatprep.mubr.f32.mxu0 %v2086_v41 }
 0x1f3   : > { %2097 = vtanh.f32 %v1016_v47  ;;  %v982_v53 = vmul.f32 %v2536_v19, %v832_v51  ;;  %1846 = vmatmul.mubr.f32.vlgmr.msra.gmra.mrb[16].mxu0 %v2088_v49 }
 0x1f4   : > { %2099 = vtanh.f32 %v1017_v31  ;;  %v1019_v54 = vadd.f32 %v2539_v20, %v983_v43 }
 0x1f5   : > { %v2090_v55 = vpop.eup %2089  ;;  %v1018_v56 = vadd.f32 %v2539_v20, %v982_v53  ;;  %v1782_v45 = vpop.f32.mrb[26].mxu1 }
 0x1f6   : > { %v2092_v57 = vpop.eup %2091  ;;  %v985_v46 = vmul.f32 %v1782_v45, %v2536_v19  ;;  %v842_v52 = vpop.f32.mrb[27].mxu1  ;;  %1848 = vmatprep.mubr.f32.mxu0 %v2090_v55 }
 0x1f7   : > { %2101 = vtanh.f32 %v1018_v56  ;;  %v984_v59 = vmul.f32 %v2536_v19, %v842_v52  ;;  %1849 = vmatmul.mubr.f32.gmra.mrb[18].mxu0 %v2092_v57 }
 0x1f8   : > { %2103 = vtanh.f32 %v1019_v54  ;;  %v1021_v61 = vadd.f32 %v2539_v20, %v985_v46 }
 0x1f9   : > { %v2094_v62 = vpop.eup %2093  ;;  %v1020_v63 = vadd.f32 %v2539_v20, %v984_v59  ;;  %v1785_v0 = vpop.f32.mrb[28].mxu1 }
 0x1fa   : > { %v2096_v1 = vpop.eup %2095  ;;  %v987_v3 = vmul.f32 %v1785_v0, %v2536_v19  ;;  %v852_v5 = vpop.f32.mrb[29].mxu1  ;;  %1851 = vmatprep.mubr.f32.mxu0 %v2094_v62 }
 0x1fb   : > { %2105 = vtanh.f32 %v1020_v63  ;;  %v986_v6 = vmul.f32 %v2536_v19, %v852_v5  ;;  %1852 = vmatmul.mubr.f32.gmra.mrb[20].mxu0 %v2096_v1 }
 0x1fc   : > { %2107 = vtanh.f32 %v1021_v61  ;;  %v1023_v7 = vadd.f32 %v2539_v20, %v987_v3 }
 0x1fd   : > { %v2098_v60 = vpop.eup %2097  ;;  %v1022_v8 = vadd.f32 %v2539_v20, %v986_v6  ;;  %v1788_v9 = vpop.f32.mrb[30].mxu1 }
 0x1fe   : > { %v2100_v50 = vpop.eup %2099  ;;  %v989_v11 = vmul.f32 %v1788_v9, %v2536_v19  ;;  %v862_v13 = vpop.f32.mrb[31].mxu1  ;;  %1854 = vmatprep.mubr.f32.mxu0 %v2098_v60 }
 0x1ff   : > { %2109 = vtanh.f32 %v1022_v8  ;;  %v988_v14 = vmul.f32 %v2536_v19, %v862_v13  ;;  %1855 = vmatmul.mubr.f32.gmra.mrb[22].mxu0 %v2100_v50 }
 0x200   : > { %2111 = vtanh.f32 %v1023_v7  ;;  %v1025_v15 = vadd.f32 %v2539_v20, %v989_v11 }
 0x201   : > { %v2102_v4 = vpop.eup %2101  ;;  %v1024_v16 = vadd.f32 %v2539_v20, %v988_v14  ;;  %v1791_v18 = vpop.f32.mrb[32].mxu1 }
 0x202   : > { %v2104_v58 = vpop.eup %2103  ;;  %v991_v12 = vmul.f32 %v1791_v18, %v2536_v19  ;;  %v872_v22 = vpop.f32.mrb[33].mxu1  ;;  %1857 = vmatprep.mubr.f32.mxu0 %v2102_v4 }
 0x203   : > { %2113 = vtanh.f32 %v1024_v16  ;;  %v990_v24 = vmul.f32 %v2536_v19, %v872_v22  ;;  %1858 = vmatmul.mubr.f32.gmra.mrb[24].mxu0 %v2104_v58 }
 0x204   : > { %2115 = vtanh.f32 %v1025_v15  ;;  %v1027_v25 = vadd.f32 %v2539_v20, %v991_v12 }
 0x205   : > { %v2106_v2 = vpop.eup %2105  ;;  %v1026_v26 = vadd.f32 %v2539_v20, %v990_v24  ;;  %v1794_v23 = vpop.f32.mrb[34].mxu1 }
 0x206   : > { %v2108_v27 = vpop.eup %2107  ;;  %v993_v28 = vmul.f32 %v1794_v23, %v2536_v19  ;;  %v882_v29 = vpop.f32.mrb[35].mxu1  ;;  %1860 = vmatprep.mubr.f32.mxu0 %v2106_v2 }
 0x207   : > { %2117 = vtanh.f32 %v1026_v26  ;;  %v992_v10 = vmul.f32 %v2536_v19, %v882_v29  ;;  %1861 = vmatmul.mubr.f32.gmra.mrb[26].mxu0 %v2108_v27 }
 0x208   : > { %2119 = vtanh.f32 %v1027_v25  ;;  %v1029_v30 = vadd.f32 %v2539_v20, %v993_v28 }
 0x209   : > { %v2110_v32 = vpop.eup %2109  ;;  %v1028_v33 = vadd.f32 %v2539_v20, %v992_v10  ;;  %v1797_v34 = vpop.f32.mrb[36].mxu1 }
 0x20a   : > { %v2112_v35 = vpop.eup %2111  ;;  %v995_v21 = vmul.f32 %v1797_v34, %v2536_v19  ;;  %v892_v36 = vpop.f32.mrb[37].mxu1  ;;  %1863 = vmatprep.mubr.f32.mxu0 %v2110_v32 }
 0x20b   : > { %2121 = vtanh.f32 %v1028_v33  ;;  %v994_v37 = vmul.f32 %v2536_v19, %v892_v36  ;;  %1864 = vmatmul.mubr.f32.gmra.mrb[28].mxu0 %v2112_v35 }
 0x20c   : > { %2123 = vtanh.f32 %v1029_v30  ;;  %v1031_v38 = vadd.f32 %v2539_v20, %v995_v21 }
 0x20d   : > { %v2114_v39 = vpop.eup %2113  ;;  %v1030_v40 = vadd.f32 %v2539_v20, %v994_v37  ;;  %v1800_v31 = vpop.f32.mrb[38].mxu1 }
 0x20e   : > { %v2116_v41 = vpop.eup %2115  ;;  %v997_v47 = vmul.f32 %v1800_v31, %v2536_v19  ;;  %v902_v48 = vpop.f32.mrb[39].mxu1  ;;  %1866 = vmatprep.mubr.f32.mxu0 %v2114_v39 }
 0x20f   : > { %2125 = vtanh.f32 %v1030_v40  ;;  %v996_v49 = vmul.f32 %v2536_v19, %v902_v48  ;;  %1867 = vmatmul.mubr.f32.gmra.mrb[30].mxu0 %v2116_v41 }
 0x210   : > { %2127 = vtanh.f32 %v1031_v38  ;;  %v1033_v43 = vadd.f32 %v2539_v20, %v997_v47 }
 0x211   : > { %v2118_v51 = vpop.eup %2117  ;;  %v1032_v53 = vadd.f32 %v2539_v20, %v996_v49  ;;  %v1803_v54 = vpop.f32.mrb[40].mxu1 }
 0x212   : > { %v2120_v55 = vpop.eup %2119  ;;  %v999_v56 = vmul.f32 %v1803_v54, %v2536_v19  ;;  %v912_v45 = vpop.f32.mrb[41].mxu1  ;;  %1869 = vmatprep.mubr.f32.mxu0 %v2118_v51 }
 0x213   : > { %2129 = vtanh.f32 %v1032_v53  ;;  %v998_v57 = vmul.f32 %v2536_v19, %v912_v45  ;;  %1870 = vmatmul.mubr.f32.gmra.mrb[32].mxu0 %v2120_v55 }
 0x214   : > { %2131 = vtanh.f32 %v1033_v43  ;;  %v1035_v46 = vadd.f32 %v2539_v20, %v999_v56 }
 0x215   : > { %v2122_v52 = vpop.eup %2121  ;;  %v1034_v59 = vadd.f32 %v2539_v20, %v998_v57  ;;  %v1806_v61 = vpop.f32.mrb[42].mxu1 }
 0x216   : > { %v2124_v62 = vpop.eup %2123  ;;  %v1001_v63 = vmul.f32 %v1806_v61, %v2536_v19  ;;  %v922_v0 = vpop.f32.mrb[43].mxu1  ;;  %1872 = vmatprep.mubr.f32.mxu0 %v2122_v52 }
 0x217   : > { %2133 = vtanh.f32 %v1034_v59  ;;  %v1000_v1 = vmul.f32 %v2536_v19, %v922_v0  ;;  %1873 = vmatmul.mubr.f32.gmra.mrb[34].mxu0 %v2124_v62 }
 0x218   : > { %2135 = vtanh.f32 %v1035_v46  ;;  %v1037_v3 = vadd.f32 %v2539_v20, %v1001_v63 }
 0x219   : > { %v2126_v5 = vpop.eup %2125  ;;  %v1036_v6 = vadd.f32 %v2539_v20, %v1000_v1  ;;  %v1809_v7 = vpop.f32.mrb[44].mxu1 }
 0x21a   : > { %v2128_v60 = vpop.eup %2127  ;;  %v1003_v8 = vmul.f32 %v1809_v7, %v2536_v19  ;;  %v932_v9 = vpop.f32.mrb[45].mxu1  ;;  %1875 = vmatprep.mubr.f32.mxu0 %v2126_v5 }
 0x21b   : > { %2137 = vtanh.f32 %v1036_v6  ;;  %v1002_v50 = vmul.f32 %v2536_v19, %v932_v9  ;;  %1876 = vmatmul.mubr.f32.gmra.mrb[36].mxu0 %v2128_v60 }
 0x21c   : > { %2139 = vtanh.f32 %v1037_v3  ;;  %v1039_v11 = vadd.f32 %v2539_v20, %v1003_v8 }
 0x21d   : > { %v2130_v13 = vpop.eup %2129  ;;  %v1038_v14 = vadd.f32 %v2539_v20, %v1002_v50  ;;  %v1812_v15 = vpop.f32.mrb[46].mxu1 }
 0x21e   : > { %v2132_v4 = vpop.eup %2131  ;;  %v1005_v16 = vmul.f32 %v1812_v15, %v2536_v19  ;;  %v942_v18 = vpop.f32.mrb[47].mxu1  ;;  %1878 = vmatprep.mubr.f32.mxu0 %v2130_v13 }
 0x21f   : > { %2141 = vtanh.f32 %v1038_v14  ;;  %v1004_v58 = vmul.f32 %v2536_v19, %v942_v18  ;;  %1879 = vmatmul.mubr.f32.gmra.mrb[38].mxu0 %v2132_v4 }
 0x220   : > { %2143 = vtanh.f32 %v1039_v11  ;;  %v1041_v12 = vadd.f32 %v2539_v20, %v1005_v16 }
 0x221   : > { %v2134_v22 = vpop.eup %2133  ;;  %v1040_v24 = vadd.f32 %v2539_v20, %v1004_v58  ;;  %v1074_v20 = vld [vmem:[%s2728_s7] sm:$0xf] }
 0x222   : > { %v2136_v25 = vpop.eup %2135  ;;  %1881 = vmatprep.mubr.f32.mxu0 %v2134_v22  ;;  %v1316_v29 = vmul.f32 %v1074_v20, %v2358_v17  ;;  %v1318_v10 = vrot.slane %v1074_v20, 1 }
 0x223   : > { %2145 = vtanh.f32 %v1040_v24  ;;  %1882 = vmatmul.mubr.f32.gmra.mrb[40].mxu0 %v2136_v25 }
 0x224   : > { %2147 = vtanh.f32 %v1041_v12  ;;  %v1320_v30 = vadd.f32 %v1318_v10, %v1316_v29  ;;  %v1332_v37 = vrot.slane %v1316_v29, 3 }
 0x225   : > { %v2138_v2 = vpop.eup %2137 }
 0x226   : > { %v2140_v26 = vpop.eup %2139  ;;  %1884 = vmatprep.mubr.f32.mxu0 %v2138_v2  ;;  %v1506_v32 = vmul.f32 -1.442695, %v1320_v30 }
 0x227   : > { %1885 = vmatmul.mubr.f32.gmra.mrb[42].mxu0 %v2140_v26 }
 0x228   : > { %2149 = vpow2.f32 %v1506_v32 }
 0x229   : > { %v2142_v23 = vpop.eup %2141 }
 0x22a   : > { %v2144_v27 = vpop.eup %2143  ;;  %1887 = vmatprep.mubr.f32.mxu0 %v2142_v23 }
 0x22b   : > { %1888 = vmatmul.mubr.f32.gmra.mrb[44].mxu0 %v2144_v27 }
 0x22d   : > { %v2146_v19 = vpop.eup %2145 }
 0x22e   : > { %v2148_v28 = vpop.eup %2147  ;;  %1890 = vmatprep.mubr.f32.mxu0 %v2146_v19 }
 0x22f   : > { %1891 = vmatmul.mubr.f32.gmra.mrb[46].mxu0 %v2148_v28 }
 0x232   : > { %v2150_v33 = vpop.eup %2149 }
 0x233   : > { %v1324_v34 = vadd.f32 1.0, %v2150_v33 }
 0x235   : > { %2151 = vrcp.f32 %v1324_v34 }
 0x23f   : > { %v2152_v35 = vpop.eup %2151 }
 0x240   : > { %v1328_v21 = vrot.slane %v2152_v35, 1  ;;  %v2610_v39 = vrot.slane %v2152_v35, %v2385_v42 }
 0x242   : > { %v1330_v36 = vmul.f32 %v1328_v21, %v1074_v20 }
 0x244   : > { %v1334_v38 = vadd.f32 %v1332_v37, %v1330_v36 }
 0x246   : > { %v2613_v40 = vrot.slane %v1334_v38, %v2387_v44 }
 0x2c6   : > { %v1847_v17 = vpop.f32.mrb[16].mxu0 }
 0x2c7   : > { %v1340_v31 = vmul.f32 %v1847_v17, %v2610_v39  ;;  %v1157_v41 = vpop.f32.mrb[17].mxu0 }
 0x2c8   : > { %v1339_v42 = vmul.f32 %v2610_v39, %v1157_v41 }
 0x2c9   : > { %v1376_v47 = vadd.f32 %v2613_v40, %v1340_v31 }
 0x2ca   : > { %v1375_v44 = vadd.f32 %v2613_v40, %v1339_v42  ;;  %v1850_v48 = vpop.f32.mrb[18].mxu0 }
 0x2cb   : > { %1408 = vst [vmem:[%s2621_s18 + $0x8] sm:$0xff] %v1376_v47  ;;  %v1342_v49 = vmul.f32 %v1850_v48, %v2610_v39  ;;  %v1167_v43 = vpop.f32.mrb[19].mxu0 }
 0x2cc   : > { %1407 = vst [vmem:[%s2621_s18] sm:$0xff] %v1375_v44  ;;  %v1341_v51 = vmul.f32 %v2610_v39, %v1167_v43 }
 0x2cd   : > { %v1378_v53 = vadd.f32 %v2613_v40, %v1342_v49 }
 0x2ce   : > { %v1377_v54 = vadd.f32 %v2613_v40, %v1341_v51  ;;  %v1853_v55 = vpop.f32.mrb[20].mxu0 }
 0x2cf   : > { %1410 = vst [vmem:[%s2621_s18 + $0x18] sm:$0xff] %v1378_v53  ;;  %v1344_v56 = vmul.f32 %v1853_v55, %v2610_v39  ;;  %v1177_v45 = vpop.f32.mrb[21].mxu0 }
 0x2d0   : > { %1409 = vst [vmem:[%s2621_s18 + $0x10] sm:$0xff] %v1377_v54  ;;  %v1343_v57 = vmul.f32 %v2610_v39, %v1177_v45 }
 0x2d1   : > { %v1380_v46 = vadd.f32 %v2613_v40, %v1344_v56 }
 0x2d2   : > { %v1379_v52 = vadd.f32 %v2613_v40, %v1343_v57  ;;  %v1856_v59 = vpop.f32.mrb[22].mxu0 }
 0x2d3   : > { %1412 = vst [vmem:[%s2621_s18 + $0x28] sm:$0xff] %v1380_v46  ;;  %v1346_v61 = vmul.f32 %v1856_v59, %v2610_v39  ;;  %v1187_v62 = vpop.f32.mrb[23].mxu0 }
 0x2d4   : > { %1411 = vst [vmem:[%s2621_s18 + $0x20] sm:$0xff] %v1379_v52  ;;  %v1345_v63 = vmul.f32 %v2610_v39, %v1187_v62 }
 0x2d5   : > { %v1382_v0 = vadd.f32 %v2613_v40, %v1346_v61 }
 0x2d6   : > { %v1381_v1 = vadd.f32 %v2613_v40, %v1345_v63  ;;  %v1859_v3 = vpop.f32.mrb[24].mxu0 }
 0x2d7   : > { %1414 = vst [vmem:[%s2621_s18 + $0x38] sm:$0xff] %v1382_v0  ;;  %v1348_v5 = vmul.f32 %v1859_v3, %v2610_v39  ;;  %v1197_v6 = vpop.f32.mrb[25].mxu0 }
 0x2d8   : > { %1413 = vst [vmem:[%s2621_s18 + $0x30] sm:$0xff] %v1381_v1  ;;  %v1347_v7 = vmul.f32 %v2610_v39, %v1197_v6 }
 0x2d9   : > { %v1384_v60 = vadd.f32 %v2613_v40, %v1348_v5 }
 0x2da   : > { %v1383_v8 = vadd.f32 %v2613_v40, %v1347_v7  ;;  %v1862_v9 = vpop.f32.mrb[26].mxu0 }
 0x2db   : > { %1416 = vst [vmem:[%s2621_s18 + $0x48] sm:$0xff] %v1384_v60  ;;  %v1350_v50 = vmul.f32 %v1862_v9, %v2610_v39  ;;  %v1207_v11 = vpop.f32.mrb[27].mxu0 }
 0x2dc   : > { %1415 = vst [vmem:[%s2621_s18 + $0x40] sm:$0xff] %v1383_v8  ;;  %v1349_v13 = vmul.f32 %v2610_v39, %v1207_v11 }
 0x2dd   : > { %v1386_v14 = vadd.f32 %v2613_v40, %v1350_v50 }
 0x2de   : > { %v1385_v15 = vadd.f32 %v2613_v40, %v1349_v13  ;;  %v1865_v4 = vpop.f32.mrb[28].mxu0 }
 0x2df   : > { %1418 = vst [vmem:[%s2621_s18 + $0x58] sm:$0xff] %v1386_v14  ;;  %v1352_v16 = vmul.f32 %v1865_v4, %v2610_v39  ;;  %v1217_v18 = vpop.f32.mrb[29].mxu0 }
 0x2e0   : > { %1417 = vst [vmem:[%s2621_s18 + $0x50] sm:$0xff] %v1385_v15  ;;  %v1351_v58 = vmul.f32 %v2610_v39, %v1217_v18 }
 0x2e1   : > { %v1388_v12 = vadd.f32 %v2613_v40, %v1352_v16 }
 0x2e2   : > { %v1387_v22 = vadd.f32 %v2613_v40, %v1351_v58  ;;  %v1868_v24 = vpop.f32.mrb[30].mxu0 }
 0x2e3   : > { %1420 = vst [vmem:[%s2621_s18 + $0x68] sm:$0xff] %v1388_v12  ;;  %v1354_v25 = vmul.f32 %v1868_v24, %v2610_v39  ;;  %v1227_v2 = vpop.f32.mrb[31].mxu0 }
 0x2e4   : > { %1419 = vst [vmem:[%s2621_s18 + $0x60] sm:$0xff] %v1387_v22  ;;  %v1353_v26 = vmul.f32 %v2610_v39, %v1227_v2 }
 0x2e5   : > { %v1390_v23 = vadd.f32 %v2613_v40, %v1354_v25 }
 0x2e6   : > { %v1389_v27 = vadd.f32 %v2613_v40, %v1353_v26  ;;  %v1871_v19 = vpop.f32.mrb[32].mxu0 }
 0x2e7   : > { %1422 = vst [vmem:[%s2621_s18 + $0x78] sm:$0xff] %v1390_v23  ;;  %v1356_v28 = vmul.f32 %v1871_v19, %v2610_v39  ;;  %v1237_v20 = vpop.f32.mrb[33].mxu0 }
 0x2e8   : > { %1421 = vst [vmem:[%s2621_s18 + $0x70] sm:$0xff] %v1389_v27  ;;  %v1355_v29 = vmul.f32 %v2610_v39, %v1237_v20 }
 0x2e9   : > { %v1392_v10 = vadd.f32 %v2613_v40, %v1356_v28 }
 0x2ea   : > { %v1391_v30 = vadd.f32 %v2613_v40, %v1355_v29  ;;  %v1874_v32 = vpop.f32.mrb[34].mxu0 }
 0x2eb   : > { %1424 = vst [vmem:[%s2621_s18 + $0x88] sm:$0xff] %v1392_v10  ;;  %v1358_v33 = vmul.f32 %v1874_v32, %v2610_v39  ;;  %v1247_v34 = vpop.f32.mrb[35].mxu0 }
 0x2ec   : > { %1423 = vst [vmem:[%s2621_s18 + $0x80] sm:$0xff] %v1391_v30  ;;  %v1357_v35 = vmul.f32 %v2610_v39, %v1247_v34 }
 0x2ed   : > { %v1394_v21 = vadd.f32 %v2613_v40, %v1358_v33 }
 0x2ee   : > { %v1393_v36 = vadd.f32 %v2613_v40, %v1357_v35  ;;  %v1877_v37 = vpop.f32.mrb[36].mxu0 }
 0x2ef   : > { %1426 = vst [vmem:[%s2621_s18 + $0x98] sm:$0xff] %v1394_v21  ;;  %v1360_v38 = vmul.f32 %v1877_v37, %v2610_v39  ;;  %v1257_v17 = vpop.f32.mrb[37].mxu0 }
 0x2f0   : > { %1425 = vst [vmem:[%s2621_s18 + $0x90] sm:$0xff] %v1393_v36  ;;  %v1359_v31 = vmul.f32 %v2610_v39, %v1257_v17 }
 0x2f1   : > { %v1396_v41 = vadd.f32 %v2613_v40, %v1360_v38 }
 0x2f2   : > { %v1395_v42 = vadd.f32 %v2613_v40, %v1359_v31  ;;  %v1880_v47 = vpop.f32.mrb[38].mxu0 }
 0x2f3   : > { %1428 = vst [vmem:[%s2621_s18 + $0xa8] sm:$0xff] %v1396_v41  ;;  %v1362_v44 = vmul.f32 %v1880_v47, %v2610_v39  ;;  %v1267_v48 = vpop.f32.mrb[39].mxu0 }
 0x2f4   : > { %1427 = vst [vmem:[%s2621_s18 + $0xa0] sm:$0xff] %v1395_v42  ;;  %v1361_v49 = vmul.f32 %v2610_v39, %v1267_v48 }
 0x2f5   : > { %v1398_v43 = vadd.f32 %v2613_v40, %v1362_v44 }
 0x2f6   : > { %v1397_v51 = vadd.f32 %v2613_v40, %v1361_v49  ;;  %v1883_v53 = vpop.f32.mrb[40].mxu0 }
 0x2f7   : > { %1430 = vst [vmem:[%s2621_s18 + $0xb8] sm:$0xff] %v1398_v43  ;;  %v1364_v54 = vmul.f32 %v1883_v53, %v2610_v39  ;;  %v1277_v55 = vpop.f32.mrb[41].mxu0 }
 0x2f8   : > { %1429 = vst [vmem:[%s2621_s18 + $0xb0] sm:$0xff] %v1397_v51  ;;  %v1363_v56 = vmul.f32 %v2610_v39, %v1277_v55 }
 0x2f9   : > { %v1400_v45 = vadd.f32 %v2613_v40, %v1364_v54 }
 0x2fa   : > { %v1399_v57 = vadd.f32 %v2613_v40, %v1363_v56  ;;  %v1886_v46 = vpop.f32.mrb[42].mxu0 }
 0x2fb   : > { %1432 = vst [vmem:[%s2621_s18 + $0xc8] sm:$0xff] %v1400_v45  ;;  %v1366_v52 = vmul.f32 %v1886_v46, %v2610_v39  ;;  %v1287_v59 = vpop.f32.mrb[43].mxu0 }
 0x2fc   : > { %1431 = vst [vmem:[%s2621_s18 + $0xc0] sm:$0xff] %v1399_v57  ;;  %v1365_v61 = vmul.f32 %v2610_v39, %v1287_v59 }
 0x2fd   : > { %v1402_v62 = vadd.f32 %v2613_v40, %v1366_v52 }
 0x2fe   : > { %v1401_v63 = vadd.f32 %v2613_v40, %v1365_v61  ;;  %v1889_v0 = vpop.f32.mrb[44].mxu0 }
 0x2ff   : > { %1434 = vst [vmem:[%s2621_s18 + $0xd8] sm:$0xff] %v1402_v62  ;;  %v1368_v1 = vmul.f32 %v1889_v0, %v2610_v39  ;;  %v1297_v3 = vpop.f32.mrb[45].mxu0 }
 0x300   : > { %1433 = vst [vmem:[%s2621_s18 + $0xd0] sm:$0xff] %v1401_v63  ;;  %v1367_v5 = vmul.f32 %v2610_v39, %v1297_v3 }
 0x301   : > { %v1404_v6 = vadd.f32 %v2613_v40, %v1368_v1 }
 0x302   : > { %v1403_v7 = vadd.f32 %v2613_v40, %v1367_v5  ;;  %v1892_v60 = vpop.f32.mrb[46].mxu0 }
 0x303   : > { %1436 = vst [vmem:[%s2621_s18 + $0xe8] sm:$0xff] %v1404_v6  ;;  %v1370_v8 = vmul.f32 %v1892_v60, %v2610_v39  ;;  %v1307_v9 = vpop.f32.mrb[47].mxu0 }
 0x304   : > { %1435 = vst [vmem:[%s2621_s18 + $0xe0] sm:$0xff] %v1403_v7  ;;  %v1369_v50 = vmul.f32 %v2610_v39, %v1307_v9 }
 0x305   : > { %v1406_v11 = vadd.f32 %v2613_v40, %v1370_v8 }
 0x306   : > { %v1405_v13 = vadd.f32 %v2613_v40, %v1369_v50 }
 0x307   : > { %1438 = vst [vmem:[%s2621_s18 + $0xf8] sm:$0xff] %v1406_v11 }
 0x308   : > { %1437 = vst [vmem:[%s2621_s18 + $0xf0] sm:$0xff] %v1405_v13 }
 0x309 PF: > { %s19_s29 = sadd.s32 1, %s2159_s29  }
 0x30a   : > { %p16_p4 = scmp.ge.s32.totalorder %s19_s29, 4  }
 0x30c   :  { %18 = sbr.rel (!%p16_p4) target bundleno = 2 (0x2), region = 82 }

</bundles_post_ra>
